<compile_context>
chip_gen: v7x
topology: tpu7x:2x2x1
jax: 0.10.0
libtpu: 0.0.40
codegen_flags: <defaults>
</compile_context>

<pallas_src>
import functools

import jax
import jax.numpy as jnp
from jax.experimental import pallas as pl
from jax.experimental.pallas import tpu as pltpu


# ----------------------------- Pallas kernel -------------------------------


def _fused_attention_kernel(x_ref, wqkv_ref, bqkv_ref, wproj_ref, bproj_ref,
                            o_ref, o_acc_ref, *, num_heads, head_dim):
    """One grid step = one batch element.

    Blocks:
      x_ref / o_ref : (1, N, C)           activations (f32 or bf16)
      wqkv_ref      : (3, H, C, D)  bf16  [0]=q (scale folded), [1]=k, [2]=v
      bqkv_ref      : (3, H, 1, D)  f32
      wproj_ref     : (C, C)        bf16
      bproj_ref     : (1, C)        f32
      o_acc_ref     : (N, C)        bf16  VMEM scratch (head-merge buffer)
    """
    d = head_dim

    xb = x_ref[0].astype(jnp.bfloat16)                       # (N, C), cast once

    for h in range(num_heads):                                # small static unroll
        # Per-head Q/K/V: full C-depth MXU GEMMs against head-major weight
        # slabs; head selection is static leading-dim ref indexing, so no
        # lane-offset slicing of activations is needed.
        q = jnp.dot(xb, wqkv_ref[0, h],
                    preferred_element_type=jnp.float32) + bqkv_ref[0, h]
        k = jnp.dot(xb, wqkv_ref[1, h],
                    preferred_element_type=jnp.float32) + bqkv_ref[1, h]
        v = jnp.dot(xb, wqkv_ref[2, h],
                    preferred_element_type=jnp.float32) + bqkv_ref[2, h]

        # Scores (softmax scale already folded into the q weights/bias).
        # Contract last dims directly -- no explicit transpose of k.
        s = jax.lax.dot_general(
            q.astype(jnp.bfloat16), k.astype(jnp.bfloat16),
            dimension_numbers=(((1,), (1,)), ((), ())),
            preferred_element_type=jnp.float32)               # (N, N) f32

        # Numerically stable softmax in f32; denominator reciprocal on the EUP.
        s = s - jnp.max(s, axis=-1, keepdims=True)
        p = jnp.exp(s)
        p = p * pl.reciprocal(jnp.sum(p, axis=-1, keepdims=True), approx=True)

        o_h = jnp.dot(p.astype(jnp.bfloat16), v.astype(jnp.bfloat16),
                      preferred_element_type=jnp.float32)     # (N, D) f32

        # Head merge: static column window of the (N, C) bf16 scratch.
        o_acc_ref[:, h * d:(h + 1) * d] = o_h.astype(jnp.bfloat16)

    # Single full-depth output projection (+ bias), lane-dense (N, C) store.
    out = jnp.dot(o_acc_ref[...], wproj_ref[...],
                  preferred_element_type=jnp.float32) + bproj_ref[...]
    o_ref[0] = out.astype(o_ref.dtype)


# --------------------------- VMEM budget helper -----------------------------


def _round_up(x, m):
    return ((x + m - 1) // m) * m


def _vmem_limit_bytes(N, C, H, D):
    """Conservative per-step VMEM estimate (bytes) for the compiler limit."""
    f32, bf16 = 4, 2
    n8, n128 = _round_up(N, 8), _round_up(N, 128)
    c128, d128 = _round_up(C, 128), _round_up(D, 128)
    est = 0
    est += 2 * 2 * n8 * c128 * f32                       # x + out blocks (double-buffered)
    est += 3 * H * _round_up(C, 16) * d128 * bf16        # qkv weight slabs (single-buffered)
    est += 3 * H * 8 * d128 * f32                        # qkv biases (padded)
    est += _round_up(C, 16) * c128 * bf16                # wproj
    est += 8 * c128 * f32                                # bproj
    est += _round_up(N, 16) * c128 * bf16                # head-merge scratch
    est += (2 * n8 * n128 + 4 * n8 * d128 + 2 * n8 * c128) * f32   # live temporaries
    return est


# ------------------------------ Module wrapper ------------------------------


class AttentionPallas:
    """JAX/Pallas equivalent of the PyTorch `Attention` module (inference fwd)."""

    def __init__(self, dim, num_heads, key):
        assert dim % num_heads == 0
        self.dim = dim
        self.num_heads = num_heads
        self.head_dim = dim // num_heads
        self.scale = self.head_dim ** (-0.5)

        kq, kkv, kp = jax.random.split(key, 3)
        std = 0.02
        # nn.Linear weight is (out, in); store pre-transposed (in, out) so the
        # math is x @ W.  trunc_normal_(std=0.02) approximated with normal*0.02
        # (synthetic init).
        self.wq = jax.random.normal(kq, (dim, dim), jnp.float32) * std
        self.wkv = jax.random.normal(kkv, (dim, 2 * dim), jnp.float32) * std
        self.wproj = jax.random.normal(kp, (dim, dim), jnp.float32) * std
        self.bq = jnp.zeros((dim,), jnp.float32)
        self.bkv = jnp.zeros((2 * dim,), jnp.float32)
        self.bproj = jnp.zeros((dim,), jnp.float32)

        # ---- kernel-layout parameters (numerics contract: bf16 weights / MXU
        # operands with f32 accumulation) ----
        H, D, C = num_heads, self.head_dim, dim

        def head_major(w):                        # (C, H*D) -> (H, C, D)
            return w.reshape(C, H, D).transpose(1, 0, 2)

        wk, wv = self.wkv[:, :C], self.wkv[:, C:]
        # Softmax scale folded into the q projection (weight AND bias).
        self.wqkv_dev = jnp.stack(
            [head_major(self.wq * self.scale), head_major(wk), head_major(wv)],
            axis=0).astype(jnp.bfloat16)                          # (3, H, C, D)
        bk, bv = self.bkv[:C], self.bkv[C:]
        self.bqkv_dev = jnp.stack(
            [(self.bq * self.scale).reshape(H, 1, D),
             bk.reshape(H, 1, D), bv.reshape(H, 1, D)],
            axis=0).astype(jnp.float32)                           # (3, H, 1, D)
        self.wproj_dev = self.wproj.astype(jnp.bfloat16)          # (C, C)
        self.bproj_dev = self.bproj.reshape(1, C).astype(jnp.float32)

    def __call__(self, x, H=None, W=None):
        # x: (B, N, C).  H, W are unused by the reference forward (API parity).
        B, N, C = x.shape
        nh, hd = self.num_heads, self.head_dim

        kernel = functools.partial(_fused_attention_kernel,
                                   num_heads=nh, head_dim=hd)

        vmem_limit = int(min(max(2 * _vmem_limit_bytes(N, C, nh, hd), 32 << 20),
                             96 << 20))

        # Constant index_map -> single-buffer the resident weights/biases.
        resident = dict(pipeline_mode=pl.Buffered(1))

        return pl.pallas_call(
            kernel,
            out_shape=jax.ShapeDtypeStruct((B, N, C), x.dtype),
            grid_spec=pltpu.PrefetchScalarGridSpec(
                num_scalar_prefetch=0,
                grid=(B,),
                in_specs=[
                    pl.BlockSpec((1, N, C), lambda b: (b, 0, 0)),               # x
                    pl.BlockSpec((3, nh, C, hd), lambda b: (0, 0, 0, 0),
                                 **resident),                                   # wqkv
                    pl.BlockSpec((3, nh, 1, hd), lambda b: (0, 0, 0, 0),
                                 **resident),                                   # bqkv
                    pl.BlockSpec((C, C), lambda b: (0, 0), **resident),         # wproj
                    pl.BlockSpec((1, C), lambda b: (0, 0), **resident),         # bproj
                ],
                out_specs=pl.BlockSpec((1, N, C), lambda b: (b, 0, 0)),
                scratch_shapes=[pltpu.VMEM((N, C), jnp.bfloat16)],
            ),
            compiler_params=pltpu.CompilerParams(
                dimension_semantics=("parallel",),
                vmem_limit_bytes=vmem_limit,
            ),
        )(x, self.wqkv_dev, self.bqkv_dev, self.wproj_dev, self.bproj_dev)


# ---------------------------------- main ------------------------------------


def _reference(x, mod):
    """Pure-jnp f32 reference matching the PyTorch forward semantics."""
    B, N, C = x.shape
    nh, hd = mod.num_heads, mod.head_dim
    q = (x @ mod.wq + mod.bq).reshape(B, N, nh, hd).transpose(0, 2, 1, 3)
    kv = x @ mod.wkv + mod.bkv
    k = kv[..., :C].reshape(B, N, nh, hd).transpose(0, 2, 1, 3)
    v = kv[..., C:].reshape(B, N, nh, hd).transpose(0, 2, 1, 3)
    s = jnp.einsum("bhqd,bhkd->bhqk", q, k) * mod.scale
    p = jax.nn.softmax(s, axis=-1)
    o = jnp.einsum("bhqk,bhkd->bhqd", p, v).transpose(0, 2, 1, 3).reshape(B, N, C)
    return o @ mod.wproj + mod.bproj


if __name__ == "__main__":
    key = jax.random.PRNGKey(0)
    kparam, kx = jax.random.split(key)

    B, Himg, Wimg = 2, 4, 4
    N = Himg * Wimg      # 16 tokens
    C = 32               # dim
    num_heads = 4        # head_dim = 8

    mod = AttentionPallas(dim=C, num_heads=num_heads, key=kparam)
    x = jax.random.normal(kx, (B, N, C), jnp.float32)

    out = mod(x, Himg, Wimg)
    jax.block_until_ready(out)

    ref = _reference(x, mod)
    assert out.shape == (B, N, C)
    # bf16 weights / MXU operands + approx-EUP reciprocal -> slightly looser
    # tolerance than a pure-f32 comparison (intended inference numerics).
    assert jnp.allclose(out, ref, atol=2e-2, rtol=2e-2), "mismatch vs reference"

    print("KERNEL_OK")
</pallas_src>

<mosaic_0001>
module attributes {stable_mosaic.version = 11 : i64} {
  func.func @_fused_attention_kernel(%arg0: i32, %arg1: memref<1x16x32xf32, #tpu.memory_space<vmem>>, %arg2: memref<3x4x32x8xbf16, #tpu.memory_space<vmem>>, %arg3: memref<3x4x1x8xf32, #tpu.memory_space<vmem>>, %arg4: memref<32x32xbf16, #tpu.memory_space<vmem>>, %arg5: memref<1x32xf32, #tpu.memory_space<vmem>>, %arg6: memref<1x16x32xf32, #tpu.memory_space<vmem>>, %arg7: memref<16x32xbf16, #tpu.memory_space<vmem>>) attributes {dimension_semantics = [#tpu.dimension_semantics<parallel>], iteration_bounds = array<i64: 2>, scalar_prefetch = 0 : i64, scratch_operands = 1 : i64, tpu.core_type = #tpu.core_type<tc>, window_params = [{transform_indices = @transform_0, window_bounds = array<i64: 1, 16, 32>}, {pipeline_mode = #tpu.pipeline_mode<synchronous>, transform_indices = @transform_1, window_bounds = array<i64: 3, 4, 32, 8>}, {pipeline_mode = #tpu.pipeline_mode<synchronous>, transform_indices = @transform_2, window_bounds = array<i64: 3, 4, 1, 8>}, {pipeline_mode = #tpu.pipeline_mode<synchronous>, transform_indices = @transform_3, window_bounds = array<i64: 32, 32>}, {pipeline_mode = #tpu.pipeline_mode<synchronous>, transform_indices = @transform_4, window_bounds = array<i64: 1, 32>}, {transform_indices = @transform_5, window_bounds = array<i64: 1, 16, 32>}]} {
    %c0 = arith.constant 0 : index
    %c0_0 = arith.constant 0 : index
    %c0_1 = arith.constant 0 : index
    %0 = vector.load %arg1[%c0, %c0_0, %c0_1] : memref<1x16x32xf32, #tpu.memory_space<vmem>>, vector<1x16x32xf32>
    %1 = vector.shape_cast %0 : vector<1x16x32xf32> to vector<16x32xf32>
    %2 = arith.truncf %1 : vector<16x32xf32> to vector<16x32xbf16>
    %c0_2 = arith.constant 0 : index
    %c0_3 = arith.constant 0 : index
    %c0_4 = arith.constant 0 : index
    %c0_5 = arith.constant 0 : index
    %3 = vector.load %arg2[%c0_2, %c0_3, %c0_4, %c0_5] : memref<3x4x32x8xbf16, #tpu.memory_space<vmem>>, vector<1x1x32x8xbf16>
    %4 = vector.shape_cast %3 : vector<1x1x32x8xbf16> to vector<32x8xbf16>
    %cst = arith.constant dense<0.000000e+00> : vector<16x8xf32>
    %5 = tpu.matmul %2, %4, %cst {dimension_numbers = #tpu.dot_dimension_numbers<[1], [0], [0], [1], [0, 0, 1, 1], [], []>} : vector<16x32xbf16>, vector<32x8xbf16>, vector<16x8xf32> -> vector<16x8xf32>
    %c0_6 = arith.constant 0 : index
    %c0_7 = arith.constant 0 : index
    %c0_8 = arith.constant 0 : index
    %c0_9 = arith.constant 0 : index
    %6 = vector.load %arg3[%c0_6, %c0_7, %c0_8, %c0_9] : memref<3x4x1x8xf32, #tpu.memory_space<vmem>>, vector<1x1x1x8xf32>
    %7 = vector.shape_cast %6 : vector<1x1x1x8xf32> to vector<1x8xf32>
    %8 = vector.broadcast %7 : vector<1x8xf32> to vector<16x8xf32>
    %9 = arith.addf %5, %8 : vector<16x8xf32>
    %c1 = arith.constant 1 : index
    %c0_10 = arith.constant 0 : index
    %c0_11 = arith.constant 0 : index
    %c0_12 = arith.constant 0 : index
    %10 = vector.load %arg2[%c1, %c0_10, %c0_11, %c0_12] : memref<3x4x32x8xbf16, #tpu.memory_space<vmem>>, vector<1x1x32x8xbf16>
    %11 = vector.shape_cast %10 : vector<1x1x32x8xbf16> to vector<32x8xbf16>
    %cst_13 = arith.constant dense<0.000000e+00> : vector<16x8xf32>
    %12 = tpu.matmul %2, %11, %cst_13 {dimension_numbers = #tpu.dot_dimension_numbers<[1], [0], [0], [1], [0, 0, 1, 1], [], []>} : vector<16x32xbf16>, vector<32x8xbf16>, vector<16x8xf32> -> vector<16x8xf32>
    %c1_14 = arith.constant 1 : index
    %c0_15 = arith.constant 0 : index
    %c0_16 = arith.constant 0 : index
    %c0_17 = arith.constant 0 : index
    %13 = vector.load %arg3[%c1_14, %c0_15, %c0_16, %c0_17] : memref<3x4x1x8xf32, #tpu.memory_space<vmem>>, vector<1x1x1x8xf32>
    %14 = vector.shape_cast %13 : vector<1x1x1x8xf32> to vector<1x8xf32>
    %15 = vector.broadcast %14 : vector<1x8xf32> to vector<16x8xf32>
    %16 = arith.addf %12, %15 : vector<16x8xf32>
    %c2 = arith.constant 2 : index
    %c0_18 = arith.constant 0 : index
    %c0_19 = arith.constant 0 : index
    %c0_20 = arith.constant 0 : index
    %17 = vector.load %arg2[%c2, %c0_18, %c0_19, %c0_20] : memref<3x4x32x8xbf16, #tpu.memory_space<vmem>>, vector<1x1x32x8xbf16>
    %18 = vector.shape_cast %17 : vector<1x1x32x8xbf16> to vector<32x8xbf16>
    %cst_21 = arith.constant dense<0.000000e+00> : vector<16x8xf32>
    %19 = tpu.matmul %2, %18, %cst_21 {dimension_numbers = #tpu.dot_dimension_numbers<[1], [0], [0], [1], [0, 0, 1, 1], [], []>} : vector<16x32xbf16>, vector<32x8xbf16>, vector<16x8xf32> -> vector<16x8xf32>
    %c2_22 = arith.constant 2 : index
    %c0_23 = arith.constant 0 : index
    %c0_24 = arith.constant 0 : index
    %c0_25 = arith.constant 0 : index
    %20 = vector.load %arg3[%c2_22, %c0_23, %c0_24, %c0_25] : memref<3x4x1x8xf32, #tpu.memory_space<vmem>>, vector<1x1x1x8xf32>
    %21 = vector.shape_cast %20 : vector<1x1x1x8xf32> to vector<1x8xf32>
    %22 = vector.broadcast %21 : vector<1x8xf32> to vector<16x8xf32>
    %23 = arith.addf %19, %22 : vector<16x8xf32>
    %24 = arith.truncf %9 : vector<16x8xf32> to vector<16x8xbf16>
    %25 = arith.truncf %16 : vector<16x8xf32> to vector<16x8xbf16>
    %cst_26 = arith.constant dense<0.000000e+00> : vector<16x16xf32>
    %26 = tpu.matmul %24, %25, %cst_26 {dimension_numbers = #tpu.dot_dimension_numbers<[1], [1], [0], [0], [0, 0, 1, 0], [], []>} : vector<16x8xbf16>, vector<16x8xbf16>, vector<16x16xf32> -> vector<16x16xf32>
    %cst_27 = arith.constant dense<0xFF800000> : vector<16xf32>
    %27 = vector.multi_reduction <maximumf>, %26, %cst_27 [1] : vector<16x16xf32> to vector<16xf32>
    %28 = vector.shape_cast %27 : vector<16xf32> to vector<16x1xf32>
    %29 = vector.broadcast %28 : vector<16x1xf32> to vector<16x16xf32>
    %30 = arith.subf %26, %29 : vector<16x16xf32>
    %31 = math.exp %30 : vector<16x16xf32>
    %cst_28 = arith.constant dense<0.000000e+00> : vector<16xf32>
    %32 = vector.multi_reduction <add>, %31, %cst_28 [1] : vector<16x16xf32> to vector<16xf32>
    %33 = vector.shape_cast %32 : vector<16xf32> to vector<16x1xf32>
    %34 = tpu.reciprocal %33 {approx = true} : vector<16x1xf32> -> vector<16x1xf32>
    %35 = vector.broadcast %34 : vector<16x1xf32> to vector<16x16xf32>
    %36 = arith.mulf %31, %35 : vector<16x16xf32>
    %37 = arith.truncf %36 : vector<16x16xf32> to vector<16x16xbf16>
    %38 = arith.truncf %23 : vector<16x8xf32> to vector<16x8xbf16>
    %cst_29 = arith.constant dense<0.000000e+00> : vector<16x8xf32>
    %39 = tpu.matmul %37, %38, %cst_29 {dimension_numbers = #tpu.dot_dimension_numbers<[1], [0], [0], [1], [0, 0, 1, 1], [], []>} : vector<16x16xbf16>, vector<16x8xbf16>, vector<16x8xf32> -> vector<16x8xf32>
    %40 = arith.truncf %39 : vector<16x8xf32> to vector<16x8xbf16>
    %c0_30 = arith.constant 0 : index
    %c0_31 = arith.constant 0 : index
    %41 = vector.load %arg7[%c0_30, %c0_31] : memref<16x32xbf16, #tpu.memory_space<vmem>>, vector<16x8xbf16>
    tpu.vector_store %arg7[%c0_30, %c0_31], %40 {strides = array<i32>} : memref<16x32xbf16, #tpu.memory_space<vmem>>, vector<16x8xbf16>,
    %c0_32 = arith.constant 0 : index
    %c1_33 = arith.constant 1 : index
    %c0_34 = arith.constant 0 : index
    %c0_35 = arith.constant 0 : index
    %42 = vector.load %arg2[%c0_32, %c1_33, %c0_34, %c0_35] : memref<3x4x32x8xbf16, #tpu.memory_space<vmem>>, vector<1x1x32x8xbf16>
    %43 = vector.shape_cast %42 : vector<1x1x32x8xbf16> to vector<32x8xbf16>
    %cst_36 = arith.constant dense<0.000000e+00> : vector<16x8xf32>
    %44 = tpu.matmul %2, %43, %cst_36 {dimension_numbers = #tpu.dot_dimension_numbers<[1], [0], [0], [1], [0, 0, 1, 1], [], []>} : vector<16x32xbf16>, vector<32x8xbf16>, vector<16x8xf32> -> vector<16x8xf32>
    %c0_37 = arith.constant 0 : index
    %c1_38 = arith.constant 1 : index
    %c0_39 = arith.constant 0 : index
    %c0_40 = arith.constant 0 : index
    %45 = vector.load %arg3[%c0_37, %c1_38, %c0_39, %c0_40] : memref<3x4x1x8xf32, #tpu.memory_space<vmem>>, vector<1x1x1x8xf32>
    %46 = vector.shape_cast %45 : vector<1x1x1x8xf32> to vector<1x8xf32>
    %47 = vector.broadcast %46 : vector<1x8xf32> to vector<16x8xf32>
    %48 = arith.addf %44, %47 : vector<16x8xf32>
    %c1_41 = arith.constant 1 : index
    %c1_42 = arith.constant 1 : index
    %c0_43 = arith.constant 0 : index
    %c0_44 = arith.constant 0 : index
    %49 = vector.load %arg2[%c1_41, %c1_42, %c0_43, %c0_44] : memref<3x4x32x8xbf16, #tpu.memory_space<vmem>>, vector<1x1x32x8xbf16>
    %50 = vector.shape_cast %49 : vector<1x1x32x8xbf16> to vector<32x8xbf16>
    %cst_45 = arith.constant dense<0.000000e+00> : vector<16x8xf32>
    %51 = tpu.matmul %2, %50, %cst_45 {dimension_numbers = #tpu.dot_dimension_numbers<[1], [0], [0], [1], [0, 0, 1, 1], [], []>} : vector<16x32xbf16>, vector<32x8xbf16>, vector<16x8xf32> -> vector<16x8xf32>
    %c1_46 = arith.constant 1 : index
    %c1_47 = arith.constant 1 : index
    %c0_48 = arith.constant 0 : index
    %c0_49 = arith.constant 0 : index
    %52 = vector.load %arg3[%c1_46, %c1_47, %c0_48, %c0_49] : memref<3x4x1x8xf32, #tpu.memory_space<vmem>>, vector<1x1x1x8xf32>
    %53 = vector.shape_cast %52 : vector<1x1x1x8xf32> to vector<1x8xf32>
    %54 = vector.broadcast %53 : vector<1x8xf32> to vector<16x8xf32>
    %55 = arith.addf %51, %54 : vector<16x8xf32>
    %c2_50 = arith.constant 2 : index
    %c1_51 = arith.constant 1 : index
    %c0_52 = arith.constant 0 : index
    %c0_53 = arith.constant 0 : index
    %56 = vector.load %arg2[%c2_50, %c1_51, %c0_52, %c0_53] : memref<3x4x32x8xbf16, #tpu.memory_space<vmem>>, vector<1x1x32x8xbf16>
    %57 = vector.shape_cast %56 : vector<1x1x32x8xbf16> to vector<32x8xbf16>
    %cst_54 = arith.constant dense<0.000000e+00> : vector<16x8xf32>
    %58 = tpu.matmul %2, %57, %cst_54 {dimension_numbers = #tpu.dot_dimension_numbers<[1], [0], [0], [1], [0, 0, 1, 1], [], []>} : vector<16x32xbf16>, vector<32x8xbf16>, vector<16x8xf32> -> vector<16x8xf32>
    %c2_55 = arith.constant 2 : index
    %c1_56 = arith.constant 1 : index
    %c0_57 = arith.constant 0 : index
    %c0_58 = arith.constant 0 : index
    %59 = vector.load %arg3[%c2_55, %c1_56, %c0_57, %c0_58] : memref<3x4x1x8xf32, #tpu.memory_space<vmem>>, vector<1x1x1x8xf32>
    %60 = vector.shape_cast %59 : vector<1x1x1x8xf32> to vector<1x8xf32>
    %61 = vector.broadcast %60 : vector<1x8xf32> to vector<16x8xf32>
    %62 = arith.addf %58, %61 : vector<16x8xf32>
    %63 = arith.truncf %48 : vector<16x8xf32> to vector<16x8xbf16>
    %64 = arith.truncf %55 : vector<16x8xf32> to vector<16x8xbf16>
    %cst_59 = arith.constant dense<0.000000e+00> : vector<16x16xf32>
    %65 = tpu.matmul %63, %64, %cst_59 {dimension_numbers = #tpu.dot_dimension_numbers<[1], [1], [0], [0], [0, 0, 1, 0], [], []>} : vector<16x8xbf16>, vector<16x8xbf16>, vector<16x16xf32> -> vector<16x16xf32>
    %cst_60 = arith.constant dense<0xFF800000> : vector<16xf32>
    %66 = vector.multi_reduction <maximumf>, %65, %cst_60 [1] : vector<16x16xf32> to vector<16xf32>
    %67 = vector.shape_cast %66 : vector<16xf32> to vector<16x1xf32>
    %68 = vector.broadcast %67 : vector<16x1xf32> to vector<16x16xf32>
    %69 = arith.subf %65, %68 : vector<16x16xf32>
    %70 = math.exp %69 : vector<16x16xf32>
    %cst_61 = arith.constant dense<0.000000e+00> : vector<16xf32>
    %71 = vector.multi_reduction <add>, %70, %cst_61 [1] : vector<16x16xf32> to vector<16xf32>
    %72 = vector.shape_cast %71 : vector<16xf32> to vector<16x1xf32>
    %73 = tpu.reciprocal %72 {approx = true} : vector<16x1xf32> -> vector<16x1xf32>
    %74 = vector.broadcast %73 : vector<16x1xf32> to vector<16x16xf32>
    %75 = arith.mulf %70, %74 : vector<16x16xf32>
    %76 = arith.truncf %75 : vector<16x16xf32> to vector<16x16xbf16>
    %77 = arith.truncf %62 : vector<16x8xf32> to vector<16x8xbf16>
    %cst_62 = arith.constant dense<0.000000e+00> : vector<16x8xf32>
    %78 = tpu.matmul %76, %77, %cst_62 {dimension_numbers = #tpu.dot_dimension_numbers<[1], [0], [0], [1], [0, 0, 1, 1], [], []>} : vector<16x16xbf16>, vector<16x8xbf16>, vector<16x8xf32> -> vector<16x8xf32>
    %79 = arith.truncf %78 : vector<16x8xf32> to vector<16x8xbf16>
    %c0_63 = arith.constant 0 : index
    %c8 = arith.constant 8 : index
    %80 = vector.load %arg7[%c0_63, %c8] : memref<16x32xbf16, #tpu.memory_space<vmem>>, vector<16x8xbf16>
    tpu.vector_store %arg7[%c0_63, %c8], %79 {strides = array<i32>} : memref<16x32xbf16, #tpu.memory_space<vmem>>, vector<16x8xbf16>,
    %c0_64 = arith.constant 0 : index
    %c2_65 = arith.constant 2 : index
    %c0_66 = arith.constant 0 : index
    %c0_67 = arith.constant 0 : index
    %81 = vector.load %arg2[%c0_64, %c2_65, %c0_66, %c0_67] : memref<3x4x32x8xbf16, #tpu.memory_space<vmem>>, vector<1x1x32x8xbf16>
    %82 = vector.shape_cast %81 : vector<1x1x32x8xbf16> to vector<32x8xbf16>
    %cst_68 = arith.constant dense<0.000000e+00> : vector<16x8xf32>
    %83 = tpu.matmul %2, %82, %cst_68 {dimension_numbers = #tpu.dot_dimension_numbers<[1], [0], [0], [1], [0, 0, 1, 1], [], []>} : vector<16x32xbf16>, vector<32x8xbf16>, vector<16x8xf32> -> vector<16x8xf32>
    %c0_69 = arith.constant 0 : index
    %c2_70 = arith.constant 2 : index
    %c0_71 = arith.constant 0 : index
    %c0_72 = arith.constant 0 : index
    %84 = vector.load %arg3[%c0_69, %c2_70, %c0_71, %c0_72] : memref<3x4x1x8xf32, #tpu.memory_space<vmem>>, vector<1x1x1x8xf32>
    %85 = vector.shape_cast %84 : vector<1x1x1x8xf32> to vector<1x8xf32>
    %86 = vector.broadcast %85 : vector<1x8xf32> to vector<16x8xf32>
    %87 = arith.addf %83, %86 : vector<16x8xf32>
    %c1_73 = arith.constant 1 : index
    %c2_74 = arith.constant 2 : index
    %c0_75 = arith.constant 0 : index
    %c0_76 = arith.constant 0 : index
    %88 = vector.load %arg2[%c1_73, %c2_74, %c0_75, %c0_76] : memref<3x4x32x8xbf16, #tpu.memory_space<vmem>>, vector<1x1x32x8xbf16>
    %89 = vector.shape_cast %88 : vector<1x1x32x8xbf16> to vector<32x8xbf16>
    %cst_77 = arith.constant dense<0.000000e+00> : vector<16x8xf32>
    %90 = tpu.matmul %2, %89, %cst_77 {dimension_numbers = #tpu.dot_dimension_numbers<[1], [0], [0], [1], [0, 0, 1, 1], [], []>} : vector<16x32xbf16>, vector<32x8xbf16>, vector<16x8xf32> -> vector<16x8xf32>
    %c1_78 = arith.constant 1 : index
    %c2_79 = arith.constant 2 : index
    %c0_80 = arith.constant 0 : index
    %c0_81 = arith.constant 0 : index
    %91 = vector.load %arg3[%c1_78, %c2_79, %c0_80, %c0_81] : memref<3x4x1x8xf32, #tpu.memory_space<vmem>>, vector<1x1x1x8xf32>
    %92 = vector.shape_cast %91 : vector<1x1x1x8xf32> to vector<1x8xf32>
    %93 = vector.broadcast %92 : vector<1x8xf32> to vector<16x8xf32>
    %94 = arith.addf %90, %93 : vector<16x8xf32>
    %c2_82 = arith.constant 2 : index
    %c2_83 = arith.constant 2 : index
    %c0_84 = arith.constant 0 : index
    %c0_85 = arith.constant 0 : index
    %95 = vector.load %arg2[%c2_82, %c2_83, %c0_84, %c0_85] : memref<3x4x32x8xbf16, #tpu.memory_space<vmem>>, vector<1x1x32x8xbf16>
    %96 = vector.shape_cast %95 : vector<1x1x32x8xbf16> to vector<32x8xbf16>
    %cst_86 = arith.constant dense<0.000000e+00> : vector<16x8xf32>
    %97 = tpu.matmul %2, %96, %cst_86 {dimension_numbers = #tpu.dot_dimension_numbers<[1], [0], [0], [1], [0, 0, 1, 1], [], []>} : vector<16x32xbf16>, vector<32x8xbf16>, vector<16x8xf32> -> vector<16x8xf32>
    %c2_87 = arith.constant 2 : index
    %c2_88 = arith.constant 2 : index
    %c0_89 = arith.constant 0 : index
    %c0_90 = arith.constant 0 : index
    %98 = vector.load %arg3[%c2_87, %c2_88, %c0_89, %c0_90] : memref<3x4x1x8xf32, #tpu.memory_space<vmem>>, vector<1x1x1x8xf32>
    %99 = vector.shape_cast %98 : vector<1x1x1x8xf32> to vector<1x8xf32>
    %100 = vector.broadcast %99 : vector<1x8xf32> to vector<16x8xf32>
    %101 = arith.addf %97, %100 : vector<16x8xf32>
    %102 = arith.truncf %87 : vector<16x8xf32> to vector<16x8xbf16>
    %103 = arith.truncf %94 : vector<16x8xf32> to vector<16x8xbf16>
    %cst_91 = arith.constant dense<0.000000e+00> : vector<16x16xf32>
    %104 = tpu.matmul %102, %103, %cst_91 {dimension_numbers = #tpu.dot_dimension_numbers<[1], [1], [0], [0], [0, 0, 1, 0], [], []>} : vector<16x8xbf16>, vector<16x8xbf16>, vector<16x16xf32> -> vector<16x16xf32>
    %cst_92 = arith.constant dense<0xFF800000> : vector<16xf32>
    %105 = vector.multi_reduction <maximumf>, %104, %cst_92 [1] : vector<16x16xf32> to vector<16xf32>
    %106 = vector.shape_cast %105 : vector<16xf32> to vector<16x1xf32>
    %107 = vector.broadcast %106 : vector<16x1xf32> to vector<16x16xf32>
    %108 = arith.subf %104, %107 : vector<16x16xf32>
    %109 = math.exp %108 : vector<16x16xf32>
    %cst_93 = arith.constant dense<0.000000e+00> : vector<16xf32>
    %110 = vector.multi_reduction <add>, %109, %cst_93 [1] : vector<16x16xf32> to vector<16xf32>
    %111 = vector.shape_cast %110 : vector<16xf32> to vector<16x1xf32>
    %112 = tpu.reciprocal %111 {approx = true} : vector<16x1xf32> -> vector<16x1xf32>
    %113 = vector.broadcast %112 : vector<16x1xf32> to vector<16x16xf32>
    %114 = arith.mulf %109, %113 : vector<16x16xf32>
    %115 = arith.truncf %114 : vector<16x16xf32> to vector<16x16xbf16>
    %116 = arith.truncf %101 : vector<16x8xf32> to vector<16x8xbf16>
    %cst_94 = arith.constant dense<0.000000e+00> : vector<16x8xf32>
    %117 = tpu.matmul %115, %116, %cst_94 {dimension_numbers = #tpu.dot_dimension_numbers<[1], [0], [0], [1], [0, 0, 1, 1], [], []>} : vector<16x16xbf16>, vector<16x8xbf16>, vector<16x8xf32> -> vector<16x8xf32>
    %118 = arith.truncf %117 : vector<16x8xf32> to vector<16x8xbf16>
    %c0_95 = arith.constant 0 : index
    %c16 = arith.constant 16 : index
    %119 = vector.load %arg7[%c0_95, %c16] : memref<16x32xbf16, #tpu.memory_space<vmem>>, vector<16x8xbf16>
    tpu.vector_store %arg7[%c0_95, %c16], %118 {strides = array<i32>} : memref<16x32xbf16, #tpu.memory_space<vmem>>, vector<16x8xbf16>,
    %c0_96 = arith.constant 0 : index
    %c3 = arith.constant 3 : index
    %c0_97 = arith.constant 0 : index
    %c0_98 = arith.constant 0 : index
    %120 = vector.load %arg2[%c0_96, %c3, %c0_97, %c0_98] : memref<3x4x32x8xbf16, #tpu.memory_space<vmem>>, vector<1x1x32x8xbf16>
    %121 = vector.shape_cast %120 : vector<1x1x32x8xbf16> to vector<32x8xbf16>
    %cst_99 = arith.constant dense<0.000000e+00> : vector<16x8xf32>
    %122 = tpu.matmul %2, %121, %cst_99 {dimension_numbers = #tpu.dot_dimension_numbers<[1], [0], [0], [1], [0, 0, 1, 1], [], []>} : vector<16x32xbf16>, vector<32x8xbf16>, vector<16x8xf32> -> vector<16x8xf32>
    %c0_100 = arith.constant 0 : index
    %c3_101 = arith.constant 3 : index
    %c0_102 = arith.constant 0 : index
    %c0_103 = arith.constant 0 : index
    %123 = vector.load %arg3[%c0_100, %c3_101, %c0_102, %c0_103] : memref<3x4x1x8xf32, #tpu.memory_space<vmem>>, vector<1x1x1x8xf32>
    %124 = vector.shape_cast %123 : vector<1x1x1x8xf32> to vector<1x8xf32>
    %125 = vector.broadcast %124 : vector<1x8xf32> to vector<16x8xf32>
    %126 = arith.addf %122, %125 : vector<16x8xf32>
    %c1_104 = arith.constant 1 : index
    %c3_105 = arith.constant 3 : index
    %c0_106 = arith.constant 0 : index
    %c0_107 = arith.constant 0 : index
    %127 = vector.load %arg2[%c1_104, %c3_105, %c0_106, %c0_107] : memref<3x4x32x8xbf16, #tpu.memory_space<vmem>>, vector<1x1x32x8xbf16>
    %128 = vector.shape_cast %127 : vector<1x1x32x8xbf16> to vector<32x8xbf16>
    %cst_108 = arith.constant dense<0.000000e+00> : vector<16x8xf32>
    %129 = tpu.matmul %2, %128, %cst_108 {dimension_numbers = #tpu.dot_dimension_numbers<[1], [0], [0], [1], [0, 0, 1, 1], [], []>} : vector<16x32xbf16>, vector<32x8xbf16>, vector<16x8xf32> -> vector<16x8xf32>
    %c1_109 = arith.constant 1 : index
    %c3_110 = arith.constant 3 : index
    %c0_111 = arith.constant 0 : index
    %c0_112 = arith.constant 0 : index
    %130 = vector.load %arg3[%c1_109, %c3_110, %c0_111, %c0_112] : memref<3x4x1x8xf32, #tpu.memory_space<vmem>>, vector<1x1x1x8xf32>
    %131 = vector.shape_cast %130 : vector<1x1x1x8xf32> to vector<1x8xf32>
    %132 = vector.broadcast %131 : vector<1x8xf32> to vector<16x8xf32>
    %133 = arith.addf %129, %132 : vector<16x8xf32>
    %c2_113 = arith.constant 2 : index
    %c3_114 = arith.constant 3 : index
    %c0_115 = arith.constant 0 : index
    %c0_116 = arith.constant 0 : index
    %134 = vector.load %arg2[%c2_113, %c3_114, %c0_115, %c0_116] : memref<3x4x32x8xbf16, #tpu.memory_space<vmem>>, vector<1x1x32x8xbf16>
    %135 = vector.shape_cast %134 : vector<1x1x32x8xbf16> to vector<32x8xbf16>
    %cst_117 = arith.constant dense<0.000000e+00> : vector<16x8xf32>
    %136 = tpu.matmul %2, %135, %cst_117 {dimension_numbers = #tpu.dot_dimension_numbers<[1], [0], [0], [1], [0, 0, 1, 1], [], []>} : vector<16x32xbf16>, vector<32x8xbf16>, vector<16x8xf32> -> vector<16x8xf32>
    %c2_118 = arith.constant 2 : index
    %c3_119 = arith.constant 3 : index
    %c0_120 = arith.constant 0 : index
    %c0_121 = arith.constant 0 : index
    %137 = vector.load %arg3[%c2_118, %c3_119, %c0_120, %c0_121] : memref<3x4x1x8xf32, #tpu.memory_space<vmem>>, vector<1x1x1x8xf32>
    %138 = vector.shape_cast %137 : vector<1x1x1x8xf32> to vector<1x8xf32>
    %139 = vector.broadcast %138 : vector<1x8xf32> to vector<16x8xf32>
    %140 = arith.addf %136, %139 : vector<16x8xf32>
    %141 = arith.truncf %126 : vector<16x8xf32> to vector<16x8xbf16>
    %142 = arith.truncf %133 : vector<16x8xf32> to vector<16x8xbf16>
    %cst_122 = arith.constant dense<0.000000e+00> : vector<16x16xf32>
    %143 = tpu.matmul %141, %142, %cst_122 {dimension_numbers = #tpu.dot_dimension_numbers<[1], [1], [0], [0], [0, 0, 1, 0], [], []>} : vector<16x8xbf16>, vector<16x8xbf16>, vector<16x16xf32> -> vector<16x16xf32>
    %cst_123 = arith.constant dense<0xFF800000> : vector<16xf32>
    %144 = vector.multi_reduction <maximumf>, %143, %cst_123 [1] : vector<16x16xf32> to vector<16xf32>
    %145 = vector.shape_cast %144 : vector<16xf32> to vector<16x1xf32>
    %146 = vector.broadcast %145 : vector<16x1xf32> to vector<16x16xf32>
    %147 = arith.subf %143, %146 : vector<16x16xf32>
    %148 = math.exp %147 : vector<16x16xf32>
    %cst_124 = arith.constant dense<0.000000e+00> : vector<16xf32>
    %149 = vector.multi_reduction <add>, %148, %cst_124 [1] : vector<16x16xf32> to vector<16xf32>
    %150 = vector.shape_cast %149 : vector<16xf32> to vector<16x1xf32>
    %151 = tpu.reciprocal %150 {approx = true} : vector<16x1xf32> -> vector<16x1xf32>
    %152 = vector.broadcast %151 : vector<16x1xf32> to vector<16x16xf32>
    %153 = arith.mulf %148, %152 : vector<16x16xf32>
    %154 = arith.truncf %153 : vector<16x16xf32> to vector<16x16xbf16>
    %155 = arith.truncf %140 : vector<16x8xf32> to vector<16x8xbf16>
    %cst_125 = arith.constant dense<0.000000e+00> : vector<16x8xf32>
    %156 = tpu.matmul %154, %155, %cst_125 {dimension_numbers = #tpu.dot_dimension_numbers<[1], [0], [0], [1], [0, 0, 1, 1], [], []>} : vector<16x16xbf16>, vector<16x8xbf16>, vector<16x8xf32> -> vector<16x8xf32>
    %157 = arith.truncf %156 : vector<16x8xf32> to vector<16x8xbf16>
    %c0_126 = arith.constant 0 : index
    %c24 = arith.constant 24 : index
    %158 = vector.load %arg7[%c0_126, %c24] : memref<16x32xbf16, #tpu.memory_space<vmem>>, vector<16x8xbf16>
    tpu.vector_store %arg7[%c0_126, %c24], %157 {strides = array<i32>} : memref<16x32xbf16, #tpu.memory_space<vmem>>, vector<16x8xbf16>,
    %c0_127 = arith.constant 0 : index
    %c0_128 = arith.constant 0 : index
    %159 = vector.load %arg7[%c0_127, %c0_128] : memref<16x32xbf16, #tpu.memory_space<vmem>>, vector<16x32xbf16>
    %c0_129 = arith.constant 0 : index
    %c0_130 = arith.constant 0 : index
    %160 = vector.load %arg4[%c0_129, %c0_130] : memref<32x32xbf16, #tpu.memory_space<vmem>>, vector<32x32xbf16>
    %cst_131 = arith.constant dense<0.000000e+00> : vector<16x32xf32>
    %161 = tpu.matmul %159, %160, %cst_131 {dimension_numbers = #tpu.dot_dimension_numbers<[1], [0], [0], [1], [0, 0, 1, 1], [], []>} : vector<16x32xbf16>, vector<32x32xbf16>, vector<16x32xf32> -> vector<16x32xf32>
    %c0_132 = arith.constant 0 : index
    %c0_133 = arith.constant 0 : index
    %162 = vector.load %arg5[%c0_132, %c0_133] : memref<1x32xf32, #tpu.memory_space<vmem>>, vector<1x32xf32>
    %163 = vector.broadcast %162 : vector<1x32xf32> to vector<16x32xf32>
    %164 = arith.addf %161, %163 : vector<16x32xf32>
    %c0_134 = arith.constant 0 : index
    %c0_135 = arith.constant 0 : index
    %c0_136 = arith.constant 0 : index
    %165 = vector.load %arg6[%c0_134, %c0_135, %c0_136] : memref<1x16x32xf32, #tpu.memory_space<vmem>>, vector<1x16x32xf32>
    %166 = vector.shape_cast %165 : vector<1x16x32xf32> to vector<16x32xf32>
    %167 = vector.shape_cast %164 : vector<16x32xf32> to vector<1x16x32xf32>
    tpu.vector_store %arg6[%c0_134, %c0_135, %c0_136], %167 {strides = array<i32>} : memref<1x16x32xf32, #tpu.memory_space<vmem>>, vector<1x16x32xf32>,
    return
  }
  func.func @transform_0(%arg0: i32) -> (i32, i32, i32) {
    %c0_i32 = arith.constant 0 : i32
    %c0_i32_0 = arith.constant 0 : i32
    %c0_i32_1 = arith.constant 0 : i32
    return %arg0, %c0_i32, %c0_i32_0 : i32, i32, i32
  }
  func.func @transform_1(%arg0: i32) -> (i32, i32, i32, i32) {
    %c0_i32 = arith.constant 0 : i32
    %c0_i32_0 = arith.constant 0 : i32
    %c0_i32_1 = arith.constant 0 : i32
    %c0_i32_2 = arith.constant 0 : i32
    %c0_i32_3 = arith.constant 0 : i32
    return %c0_i32, %c0_i32_0, %c0_i32_1, %c0_i32_2 : i32, i32, i32, i32
  }
  func.func @transform_2(%arg0: i32) -> (i32, i32, i32, i32) {
    %c0_i32 = arith.constant 0 : i32
    %c0_i32_0 = arith.constant 0 : i32
    %c0_i32_1 = arith.constant 0 : i32
    %c0_i32_2 = arith.constant 0 : i32
    %c0_i32_3 = arith.constant 0 : i32
    return %c0_i32, %c0_i32_0, %c0_i32_1, %c0_i32_2 : i32, i32, i32, i32
  }
  func.func @transform_3(%arg0: i32) -> (i32, i32) {
    %c0_i32 = arith.constant 0 : i32
    %c0_i32_0 = arith.constant 0 : i32
    %c0_i32_1 = arith.constant 0 : i32
    return %c0_i32, %c0_i32_0 : i32, i32
  }
  func.func @transform_4(%arg0: i32) -> (i32, i32) {
    %c0_i32 = arith.constant 0 : i32
    %c0_i32_0 = arith.constant 0 : i32
    %c0_i32_1 = arith.constant 0 : i32
    return %c0_i32, %c0_i32_0 : i32, i32
  }
  func.func @transform_5(%arg0: i32) -> (i32, i32, i32) {
    %c0_i32 = arith.constant 0 : i32
    %c0_i32_0 = arith.constant 0 : i32
    %c0_i32_1 = arith.constant 0 : i32
    return %arg0, %c0_i32, %c0_i32_0 : i32, i32, i32
  }
}

</mosaic_0001>

<bundles_post_ra>
// kernel: tpu_custom_call.1
= control target key start
LH: loop header
LB: loop body
LE: loop exit
PB: predicated region body
PF: predicated region fallthrough
CT: control target
= control target key end

     0   :  { %10 = vsyncpa [#allocation4], 0  ;;  %s2565_s0 = inlined_call_operand.vmem [shape: f32[2,16,32], index: 0, kind: input, shape index: {}]   ;;  %s2566_s1 = inlined_call_operand.vmem [shape: bf16[3,4,32,8], index: 1, kind: input, shape index: {}]   ;;  %s2567_s2 = inlined_call_operand.vmem [shape: f32[3,4,1,8], index: 2, kind: input, shape index: {}]   ;;  %s2568_s3 = inlined_call_operand.vmem [shape: bf16[32,32], index: 3, kind: input, shape index: {}]   ;;  %s2569_s4 = inlined_call_operand.vmem [shape: f32[1,32], index: 4, kind: input, shape index: {}]   ;;  %s2570_s5 = inlined_call_operand.hbm [shape: f32[2,16,32], index: 5, kind: output, shape index: {}]  }
   0x1   :  { %12 = vsyncpa [#allocation4 + $0x1], 0  ;;  %s2200_s18 = smov 0   ;;  %s2202_s19 = smov 0  }
   0x2   :  { %s2204_s20 = smov 0   ;;  %s2206_s21 = smov 0  }
   0x3 LB: > { %s2221_s22 = sadd.s32 4294967295, %s2161_s21   ;;  %s1660_s23 = sadd.s32 4294967294, %s2161_s21   ;;  %s2161_s21 = sphi %s2206_s21, %s2576_s21   ;;  %s2157_s20 = sphi %s2204_s20, %s2575_s20   ;;  %s2153_s19 = sphi %s2202_s19, %s2574_s19   ;;  %s2149_s18 = sphi %s2200_s18, %s2573_s18  }
   0x4   : > { %s2225_s24 = sadd.s32 1, %s2161_s21   ;;  %s135_s25 = sadd.s32 1, %s2157_s20 }
   0x5   : > { %s132_s26 = ssub.s32 %s2161_s21, %s2225_s24  ;;  %p145_p0 = scmp.ne.s32.totalorder %s2157_s20, %s2153_s19 }
   0x6   : > { %p133_p1 = scmp.eq.s32.totalorder %s132_s26, 0  ;;  %p146_p2 = scmp.eq.s32.totalorder %s2221_s22, 1 }
   0x7   : > { %p151_p3 = scmp.ne.s32.totalorder %s2153_s19, %s2149_s18  ;;  %p152_p4 = scmp.eq.s32.totalorder %s1660_s23, 1 }
   0x8   : > { %s2236_s27 = scalar_select %p133_p1, %s2157_s20, %s135_s25  }
   0x9   : > { %p2238_p5 = por %p146_p2, %p145_p0  ;;  %p2242_p6 = por %p152_p4, %p151_p3 }
   0xa   : > { %p1663_p7 = scmp.ge.s32.totalorder %s2161_s21, 1  ;;  %p190_p8 = scmp.lt.s32.totalorder %s2161_s21, 3 }
   0xc   : > { %p191_p9 = pnand %p1663_p7, %p190_p8 }
   0xd   : > { %v2041_v0 = vld [vmem:[%s2566_s1 + $0x40] sm:$0xff] (!%p191_p9)   ;;  %v2163_v1 = vmov (!%p191_p9), 0.0   ;;  %v2042_v2 = vld [vmem:[%s2566_s1 + $0x48] sm:$0xff] (!%p191_p9)   ;;  %vm2164_vm0 = vmmov (!%p191_p9), 0   ;;  %p218_p10 = scmp.lt.s32.totalorder (!%p191_p9), %s2221_s22, 1  ;;  %vm250_vm1 = vcmask (!%p191_p9), 261120  }
   0xe   : > { %194 = sbr.rel (%p191_p9) target bundleno = 3648 (0xe40), region = 40  ;;  %1852 = vmatprep.subr.bf16.mxu1 (!%p191_p9), %v2163_v1  ;;  %1844 = vmatprep.subr.bf16.mxu0 (!%p191_p9), %v2163_v1  ;;  %v2043_v3 = vld [vmem:[%s2566_s1] sm:$0xff] (!%p191_p9)   ;;  %v2044_v4 = vld [vmem:[%s2566_s1 + $0x8] sm:$0xff] (!%p191_p9)   ;;  %vm429_vm2 = vcmask (!%p191_p9), 64512   ;;  %vm477_vm3 = vcmask (!%p191_p9), 130048   ;;  %v2049_v51 = vld [vmem:[%s2566_s1 + $0x10] sm:$0xff] (!%p191_p9)  }
   0xf   : > { %1853 = vmatpush3.bf16.msra.mxu1 (!%p191_p9), %v2041_v0  ;;  %1856 = vmatprep.mubr.msk.bf16.mxu1 (!%p191_p9), %vm2164_vm0, %v2163_v1  ;;  %v1667_v8 = vld [vmem:[%s2567_s2] ss:$0 sm:$0xff] (!%p191_p9)  ;;  %v1676_v9 = vld [vmem:[%s2567_s2 + $0x4] ss:$0 sm:$0xff] (!%p191_p9)  ;;  %v2046_v26 = vld [vmem:[%s2566_s1 + $0x88] sm:$0xff] (!%p191_p9)   ;;  %s2165_s16 = smov (!%p191_p9), 16  }
  0x10   : > { %1854 = vmatprep.subr.bf16.mxu1 (!%p191_p9), %v2163_v1  ;;  %1848 = vmatprep.mubr.msk.bf16.mxu0 (!%p191_p9), %vm2164_vm0, %v2163_v1  ;;  %v2045_v25 = vld [vmem:[%s2566_s1 + $0x80] sm:$0xff] (!%p191_p9)   ;;  %v1685_v46 = vld [vmem:[%s2567_s2 + $0x8] ss:$0 sm:$0xff] (!%p191_p9)  ;;  %v2050_v52 = vld [vmem:[%s2566_s1 + $0x18] sm:$0xff] (!%p191_p9)   ;;  %s2166_s25 = smov (!%p191_p9), 8   ;;  %vm868_vm4 = vcmask (!%p191_p9), 130112  }
  0x11   : > { %1845 = vmatpush3.bf16.msra.mxu0 (!%p191_p9), %v2043_v3  ;;  %v2047_v59 = vld [vmem:[%s2566_s1 + $0x50] sm:$0xff] (!%p191_p9)   ;;  %v2048_v61 = vld [vmem:[%s2566_s1 + $0x58] sm:$0xff] (!%p191_p9)   ;;  %v1696_v62 = vld [vmem:[%s2567_s2 + $0x1] ss:$0 sm:$0xff] (!%p191_p9)  ;;  %vm1190_vm5 = vcmask (!%p191_p9), 195712   ;;  %s2167_s8 = smov (!%p191_p9), 24  }
  0x12   : > { %1846 = vmatprep.subr.bf16.mxu0 (!%p191_p9), %v2163_v1  ;;  %vm1512_vm6 = vcmask (!%p191_p9), 261312   ;;  %s215_s9 = sand.u32 (!%p191_p9), 1, %s2153_s19   ;;  %s1788_s15 = sshll.u32 (!%p191_p9), %s2221_s22, 8 }
  0x13   : > { %1855 = vmatpush3.bf16.msra.mxu1 (!%p191_p9), %v2042_v2  ;;  %s1664_s10 = sshll.u32 (!%p191_p9), %s215_s9, 4  ;;  %s2520_s23 = scalar_lea.hbm (!%p191_p9), %s2570_s5, %s1788_s15 }
  0x14   : > { %1868 = vmatprep.subr.bf16.mxu1 (!%p191_p9), %v2163_v1  ;;  %s217_s13 = scalar_lea.vmem (!%p191_p9), [#allocation3], %s1664_s10  ;;  %s2168_s30 = smov (!%p191_p9), [#allocation3]  }
  0x15   : > { %s219_s11 = scalar_select %p218_p10, %s2221_s22, 1  ;;  %1847 = vmatpush3.bf16.msra.mxu0 %v2044_v4 }
  0x16   : > { %1860 = vmatprep.subr.bf16.mxu0 %v2163_v1  ;;  %s2523_s22 = scalar_lea.sflag [#allocation4], %s215_s9  ;;  %s2103_s6 = sshll.u32 %s2168_s30, 4  ;;  %s2104_s6 = int_to_ptr.vmem [resolvable:$false] %s2103_s6 }
  0x17   : > { %s1787_s14 = sshll.u32 %s219_s11, 4  ;;  %s2105_s7 = scalar_lea.vmem %s2104_s6, 512 }
  0x18   : > { %s222_s17 = scalar_lea.vmem %s2565_s0, %s1787_s14  ;;  %s1598_s14 = sshll.u32 %s217_s13, 4  ;;  %s2514_s14 = int_to_ptr.vmem [resolvable:$true] %s1598_s14 }
  0x19   : > { %v224_v5 = vld [vmem:[%s222_s17] sm:$0xff]  ;;  %v225_v6 = vld [vmem:[%s222_s17 + $0x8] sm:$0xff]  ;;  %s2099_s26 = scalar_lea.vmem %s2514_s14, 256  ;;  %p2106_p0 = scmp.lt.s32.totalorder %s2514_s14, %s2104_s6 }
  0x1a   : > { %v2274_v7 = vpack.c.bf16 %v225_v6, %v224_v5  ;;  %p2100_p11 = scmp.ne.s32.totalorder %s2514_s14, %s2099_s26  ;;  %p2107_p1 = scmp.lt.s32.totalorder %s2105_s7, %s2099_s26 }
  0x1c   : > { %1857 = vmatmul.mubr.msk.bf16.vlgmr.msra.gmra.mrb[0].mxu1 %vm250_vm1, %v2274_v7  ;;  %1849 = vmatmul.mubr.msk.bf16.vlgmr.msra.gmra.mrb[0].mxu0 %vm250_vm1, %v2274_v7  ;;  %p2101_p12 = pnand %p2100_p11, %p2238_p5  ;;  %p2108_p2 = por %p2107_p1, %p2106_p0 }
  0x1d   : > { %1870 = vmatprep.mubr.msk.bf16.mxu1 %vm2164_vm0, %v2163_v1  ;;  %1864 = vmatprep.mubr.msk.bf16.mxu0 %vm2164_vm0, %v2163_v1 }
  0x1e   : > { %1861 = vmatpush3.bf16.msra.mxu0 %v2045_v25  ;;  %p2102_p13 = pneg %p2101_p12 }
  0x1f   : > { %1862 = vmatprep.subr.bf16.mxu0 %v2163_v1 }
  0x20   : > { %p2109_p3 = pnand %p2108_p2, %p2102_p13 }
  0x22   : > { %1863 = vmatpush3.bf16.msra.mxu0 %v2046_v26 }
  0x23   : > { %1874 = vmatprep.subr.bf16.mxu0 %v2163_v1 }
  0x25   : > { %1865 = vmatmul.mubr.msk.bf16.vlgmr.msra.gmra.mrb[4].mxu0 %vm250_vm1, %v2274_v7 }
  0x26   : > { %1876 = vmatprep.mubr.msk.bf16.mxu0 %vm2164_vm0, %v2163_v1 }
  0xef   : > { %v354_v10 = vpop.f32.mrb[0].mxu1  ;;  %v288_v11 = vpop.f32.mrb[0].mxu0 }
  0xf0   : > { %v1858_v12 = vpop.f32.mrb[1].mxu1  ;;  %v289_v13 = vadd.f32 %v1667_v8, %v288_v11  ;;  %v1850_v14 = vpop.f32.mrb[1].mxu0  ;;  %v355_v17 = vadd.f32 %v1676_v9, %v354_v10 }
  0xf1   : > { %v357_v15 = vpop.f32.mrb[2].mxu1  ;;  %v291_v16 = vpop.f32.mrb[2].mxu0 }
  0xf2   : > { %v358_v18 = vadd.f32 %v1676_v9, %v357_v15  ;;  %v1859_v19 = vpop.f32.mrb[3].mxu1  ;;  %v292_v20 = vadd.f32 %v1667_v8, %v291_v16  ;;  %v1851_v21 = vpop.f32.mrb[3].mxu0 }
  0xf4   : > { %v428_v22 = vpack.c.bf16 %v358_v18, %v355_v17  ;;  %v427_v23 = vpack.c.bf16 %v292_v20, %v289_v13  ;;  %v1705_v13 = vld [vmem:[%s2567_s2 + $0x5] ss:$0 sm:$0xff] }
  0xf6   : > { %v434_v24 = vsel %vm429_vm2, %v428_v22, 0  ;;  %v2051_v22 = vld [vmem:[%s2566_s1 + $0x90] sm:$0xff]  }
  0xf7   : > { %1869 = vmatpush3.bf16.xpose.msra.mxu1 %v434_v24 }
  0xf8   : > { %1880 = vmatprep.subr.bf16.mxu1 %v2163_v1  ;;  %v420_v43 = vpop.f32.mrb[4].mxu0 }
  0xf9   : > { %v1866_v44 = vpop.f32.mrb[5].mxu0  ;;  %v421_v48 = vadd.f32 %v1685_v46, %v420_v43  ;;  %v1714_v43 = vld [vmem:[%s2567_s2 + $0x9] ss:$0 sm:$0xff] }
  0xfa   : > { %v423_v45 = vpop.f32.mrb[6].mxu0 }
  0xfb   : > { %v1867_v47 = vpop.f32.mrb[7].mxu0  ;;  %v424_v49 = vadd.f32 %v1685_v46, %v423_v45 }
  0xfd   : > { %v501_v50 = vpack.c.bf16 %v424_v49, %v421_v48  ;;  %v2055_v48 = vld [vmem:[%s2566_s1 + $0x20] sm:$0xff]   ;;  %v2056_v49 = vld [vmem:[%s2566_s1 + $0x28] sm:$0xff]  }
  0xfe   : > { %1871 = vmatmul.mubr.msk.bf16.vlgmr.msra.gmra.mrb[4].mxu1 %vm429_vm2, %v427_v23  ;;  %v2052_v23 = vld [vmem:[%s2566_s1 + $0x98] sm:$0xff]  }
  0xff   : > { %1884 = vmatprep.mubr.msk.bf16.mxu1 %vm2164_vm0, %v2163_v1  ;;  %1875 = vmatpush3.bf16.msra.mxu0 %v501_v50 }
 0x100   : > { %1888 = vmatprep.subr.bf16.mxu0 %v2163_v1  ;;  %1881 = vmatpush3.bf16.msra.mxu1 %v2049_v51 }
 0x101   : > { %1882 = vmatprep.subr.bf16.mxu1 %v2163_v1 }
 0x104   : > { %1883 = vmatpush3.bf16.msra.mxu1 %v2050_v52 }
 0x105   : > { %1896 = vmatprep.subr.bf16.mxu1 %v2163_v1 }
 0x107   : > { %1885 = vmatmul.mubr.msk.bf16.vlgmr.msra.gmra.mrb[8].mxu1 %vm250_vm1, %v2274_v7 }
 0x108   : > { %1900 = vmatprep.mubr.msk.bf16.mxu1 %vm2164_vm0, %v2163_v1  ;;  %1897 = vmatpush3.bf16.msra.mxu1 %v2051_v22 }
 0x109   : > { %1898 = vmatprep.subr.bf16.mxu1 %v2163_v1 }
 0x10c   : > { %1899 = vmatpush3.bf16.msra.mxu1 %v2052_v23 }
 0x10d   : > { %1910 = vmatprep.subr.bf16.mxu1 %v2163_v1 }
 0x10f   : > { %1901 = vmatmul.mubr.msk.bf16.vlgmr.msra.gmra.mrb[12].mxu1 %vm250_vm1, %v2274_v7 }
 0x110   : > { %1912 = vmatprep.mubr.msk.bf16.mxu1 %vm2164_vm0, %v2163_v1 }
 0x1d1   : > { %v470_v27 = vpop.f32.mrb[4].mxu1 }
 0x1d2   : > { %v1872_v28 = vpop.f32.mrb[5].mxu1  ;;  %v478_v29 = vsel %vm477_vm3, %v470_v27, -inf }
 0x1d3   : > { %479 = vmax.xlane.f32.xlu0 %v478_v29  ;;  %v473_v30 = vpop.f32.mrb[6].mxu1 }
 0x1d4   : > { %v1873_v31 = vpop.f32.mrb[7].mxu1  ;;  %v481_v32 = vsel %vm477_vm3, %v473_v30, -inf }
 0x1d7   : > { %482 = vmax.xlane.f32.xlu0 %v481_v32 }
 0x1da   : > { %v607_v63 = vpop.f32.mrb[8].mxu1 }
 0x1db   : > { %v608_v0 = vadd.f32 %v1696_v62, %v607_v63  ;;  %v1886_v2 = vpop.f32.mrb[9].mxu1 }
 0x1dc   : > { %v610_v3 = vpop.f32.mrb[10].mxu1 }
 0x1dd   : > { %v611_v4 = vadd.f32 %v1696_v62, %v610_v3  ;;  %v1887_v5 = vpop.f32.mrb[11].mxu1 }
 0x1df   : > { %v746_v6 = vpack.c.bf16 %v611_v4, %v608_v0 }
 0x260   : > { %v480_v33 = vpop.xlane.xlu0 %479 }
 0x261   : > { %v484_v34 = vsub.f32 %v470_v27, %v480_v33 }
 0x263   : > { %v486_v35 = vmul.f32 1.442695, %v484_v34 }
 0x264   : > { %v483_v36 = vpop.xlane.xlu0 %482 }
 0x265   : > { %2067 = vpow2.f32 %v486_v35  ;;  %v485_v37 = vsub.f32 %v473_v30, %v483_v36 }
 0x267   : > { %v488_v38 = vmul.f32 1.442695, %v485_v37 }
 0x269   : > { %2069 = vpow2.f32 %v488_v38 }
 0x26f   : > { %v2068_v39 = vpop.eup %2067 }
 0x270   : > { %v490_v40 = vsel %vm477_vm3, %v2068_v39, 0.0 }
 0x271   : > { %491 = vadd.xlane.f32.xlu1 %v490_v40  ;;  %v739_v40 = vpop.f32.mrb[12].mxu1 }
 0x272   : > { %v740_v45 = vadd.f32 %v1714_v43, %v739_v40  ;;  %v1743_v40 = vld [vmem:[%s2567_s2 + $0xa] ss:$0 sm:$0xff] }
 0x273   : > { %v2070_v41 = vpop.eup %2069 }
 0x274   : > { %v493_v42 = vsel %vm477_vm3, %v2070_v41, 0.0 }
 0x275   : > { %494 = vadd.xlane.f32.xlu1 %v493_v42 }
 0x2fe   : > { %v492_v53 = vpop.xlane.xlu1 %491 }
 0x2ff   : > { %2071 = vrcp.f32 %v492_v53 }
 0x302   : > { %v495_v54 = vpop.xlane.xlu1 %494 }
 0x303   : > { %2073 = vrcp.f32 %v495_v54 }
 0x309   : > { %v2072_v55 = vpop.eup %2071 }
 0x30a   : > { %v498_v57 = vmul.f32 %v2072_v55, %v2068_v39 }
 0x30d   : > { %v2074_v56 = vpop.eup %2073 }
 0x30e   : > { %v499_v58 = vmul.f32 %v2074_v56, %v2070_v41  ;;  %v1902_v41 = vpop.f32.mrb[13].mxu1  ;;  %v2053_v56 = vld [vmem:[%s2566_s1 + $0x60] sm:$0xff]  }
 0x30f   : > { %v742_v42 = vpop.f32.mrb[14].mxu1 }
 0x310   : > { %v500_v60 = vpack.c.bf16 %v499_v58, %v498_v57  ;;  %v1903_v44 = vpop.f32.mrb[15].mxu1  ;;  %v743_v46 = vadd.f32 %v1714_v43, %v742_v42  ;;  %v2054_v58 = vld [vmem:[%s2566_s1 + $0x68] sm:$0xff]  }
 0x312   : > { %1877 = vmatmul.mubr.msk.bf16.vlgmr.msra.gmra.mrb[8].mxu0 %vm477_vm3, %v500_v60  ;;  %v818_v47 = vpack.c.bf16 %v743_v46, %v740_v45  ;;  %v2061_v45 = vld [vmem:[%s2566_s1 + $0x30] sm:$0xff]   ;;  %v2062_v46 = vld [vmem:[%s2566_s1 + $0x38] sm:$0xff]  }
 0x313   : > { %1889 = vmatpush3.bf16.msra.mxu0 %v2047_v59  ;;  %1892 = vmatprep.mubr.msk.bf16.mxu0 %vm2164_vm0, %v2163_v1  ;;  %v1725_v59 = vld [vmem:[%s2567_s2 + $0x2] ss:$0 sm:$0xff] }
 0x314   : > { %1890 = vmatprep.subr.bf16.mxu0 %v2163_v1  ;;  %1911 = vmatpush3.bf16.msra.mxu1 %v818_v47 }
 0x315   : > { %1924 = vmatprep.subr.bf16.mxu1 %v2163_v1 }
 0x317   : > { %1891 = vmatpush3.bf16.msra.mxu0 %v2048_v61 }
 0x318   : > { %1904 = vmatprep.subr.bf16.mxu0 %v2163_v1 }
 0x31a   : > { %1893 = vmatmul.mubr.msk.bf16.vlgmr.msra.gmra.mrb[12].mxu0 %vm250_vm1, %v2274_v7 }
 0x31b   : > { %1906 = vmatprep.mubr.msk.bf16.mxu0 %vm2164_vm0, %v2163_v1 }
 0x3e5   : > { %v539_v8 = vpop.f32.mrb[8].mxu0 }
 0x3e6   : > { %v1878_v9 = vpop.f32.mrb[9].mxu0 }
 0x3e7   : > { %v542_v10 = vpop.f32.mrb[10].mxu0 }
 0x3e8   : > { %v546_v11 = vpack.c.bf16 %v542_v10, %v539_v8  ;;  %v1879_v12 = vpop.f32.mrb[11].mxu0  ;;  %v1734_v10 = vld [vmem:[%s2567_s2 + $0x6] ss:$0 sm:$0xff] }
 0x3ea   : > { %547 = vst.msk [vmem:[#allocation2] sm:$0xff] %vm429_vm2, %v546_v11 }
 0x3ed   : > { %v673_v14 = vpop.f32.mrb[12].mxu0 }
 0x3ee   : > { %v1894_v15 = vpop.f32.mrb[13].mxu0  ;;  %v674_v17 = vadd.f32 %v1705_v13, %v673_v14 }
 0x3ef   : > { %v676_v16 = vpop.f32.mrb[14].mxu0 }
 0x3f0   : > { %v677_v18 = vadd.f32 %v1705_v13, %v676_v16  ;;  %v1895_v19 = vpop.f32.mrb[15].mxu0 }
 0x3f1   : > { %v2057_v19 = vld [vmem:[%s2566_s1 + $0xa0] sm:$0xff]  }
 0x3f2   : > { %v747_v20 = vpack.c.bf16 %v677_v18, %v674_v17 }
 0x3f4   : > { %v752_v21 = vsel %vm429_vm2, %v747_v20, 0  ;;  %v2058_v20 = vld [vmem:[%s2566_s1 + $0xa8] sm:$0xff]  }
 0x3f5   : > { %1905 = vmatpush3.bf16.xpose.msra.mxu0 %v752_v21 }
 0x3f6   : > { %1916 = vmatprep.subr.bf16.mxu0 %v2163_v1 }
 0x3fc   : > { %1907 = vmatmul.mubr.msk.bf16.vlgmr.msra.gmra.mrb[16].mxu0 %vm429_vm2, %v746_v6 }
 0x3fd   : > { %1920 = vmatprep.mubr.msk.bf16.mxu0 %vm2164_vm0, %v2163_v1  ;;  %1917 = vmatpush3.bf16.msra.mxu0 %v2055_v48 }
 0x3fe   : > { %1918 = vmatprep.subr.bf16.mxu0 %v2163_v1 }
 0x401   : > { %1919 = vmatpush3.bf16.msra.mxu0 %v2056_v49 }
 0x402   : > { %1932 = vmatprep.subr.bf16.mxu0 %v2163_v1 }
 0x404   : > { %1921 = vmatmul.mubr.msk.bf16.vlgmr.msra.gmra.mrb[20].mxu0 %vm250_vm1, %v2274_v7 }
 0x405   : > { %1936 = vmatprep.mubr.msk.bf16.mxu0 %vm2164_vm0, %v2163_v1  ;;  %1933 = vmatpush3.bf16.msra.mxu0 %v2057_v19  ;;  %v2063_v19 = vld [vmem:[%s2566_s1 + $0xb0] sm:$0xff]  }
 0x406   : > { %1934 = vmatprep.subr.bf16.mxu0 %v2163_v1 }
 0x409   : > { %1935 = vmatpush3.bf16.msra.mxu0 %v2058_v20  ;;  %v2064_v20 = vld [vmem:[%s2566_s1 + $0xb8] sm:$0xff]  }
 0x40a   : > { %1946 = vmatprep.subr.bf16.mxu0 %v2163_v1 }
 0x40c   : > { %1937 = vmatmul.mubr.msk.bf16.vlgmr.msra.gmra.mrb[24].mxu0 %vm250_vm1, %v2274_v7 }
 0x40d   : > { %1948 = vmatprep.mubr.msk.bf16.mxu0 %vm2164_vm0, %v2163_v1 }
 0x4cf   : > { %v788_v24 = vpop.f32.mrb[16].mxu0 }
 0x4d0   : > { %v1908_v25 = vpop.f32.mrb[17].mxu0  ;;  %v795_v26 = vsel %vm477_vm3, %v788_v24, -inf }
 0x4d1   : > { %796 = vmax.xlane.f32.xlu0 %v795_v26  ;;  %v791_v27 = vpop.f32.mrb[18].mxu0 }
 0x4d2   : > { %v1909_v28 = vpop.f32.mrb[19].mxu0  ;;  %v798_v29 = vsel %vm477_vm3, %v791_v27, -inf }
 0x4d3   : > { %799 = vmax.xlane.f32.xlu1 %v798_v29 }
 0x4d7   : > { %v929_v60 = vpop.f32.mrb[20].mxu0 }
 0x4d8   : > { %v930_v61 = vadd.f32 %v1725_v59, %v929_v60  ;;  %v1922_v62 = vpop.f32.mrb[21].mxu0 }
 0x4d9   : > { %v932_v63 = vpop.f32.mrb[22].mxu0 }
 0x4da   : > { %v933_v0 = vadd.f32 %v1725_v59, %v932_v63  ;;  %v1923_v2 = vpop.f32.mrb[23].mxu0 }
 0x4dc   : > { %v1068_v3 = vpack.c.bf16 %v933_v0, %v930_v61 }
 0x55e   : > { %v797_v30 = vpop.xlane.xlu0 %796 }
 0x55f   : > { %v801_v31 = vsub.f32 %v788_v24, %v797_v30 }
 0x560   : > { %v800_v32 = vpop.xlane.xlu1 %799 }
 0x561   : > { %v803_v33 = vmul.f32 1.442695, %v801_v31  ;;  %v802_v34 = vsub.f32 %v791_v27, %v800_v32 }
 0x563   : > { %2075 = vpow2.f32 %v803_v33  ;;  %v805_v35 = vmul.f32 1.442695, %v802_v34 }
 0x565   : > { %2077 = vpow2.f32 %v805_v35 }
 0x56d   : > { %v2076_v36 = vpop.eup %2075 }
 0x56e   : > { %v807_v37 = vsel %vm477_vm3, %v2076_v36, 0.0 }
 0x56f   : > { %v2078_v38 = vpop.eup %2077  ;;  %808 = vadd.xlane.f32.xlu0 %v807_v37  ;;  %v1061_v37 = vpop.f32.mrb[24].mxu0 }
 0x570   : > { %v810_v39 = vsel %vm477_vm3, %v2078_v38, 0.0  ;;  %v1062_v42 = vadd.f32 %v1743_v40, %v1061_v37 }
 0x571   : > { %811 = vadd.xlane.f32.xlu1 %v810_v39 }
 0x5fc   : > { %v809_v50 = vpop.xlane.xlu0 %808 }
 0x5fd   : > { %2079 = vrcp.f32 %v809_v50 }
 0x5fe   : > { %v812_v51 = vpop.xlane.xlu1 %811 }
 0x5ff   : > { %2081 = vrcp.f32 %v812_v51 }
 0x607   : > { %v2080_v52 = vpop.eup %2079 }
 0x608   : > { %v815_v54 = vmul.f32 %v2080_v52, %v2076_v36 }
 0x609   : > { %v2082_v53 = vpop.eup %2081 }
 0x60a   : > { %v816_v55 = vmul.f32 %v2082_v53, %v2078_v38  ;;  %v1938_v38 = vpop.f32.mrb[25].mxu0  ;;  %v2059_v53 = vld [vmem:[%s2566_s1 + $0x70] sm:$0xff]  }
 0x60b   : > { %v1064_v39 = vpop.f32.mrb[26].mxu0 }
 0x60c   : > { %v817_v57 = vpack.c.bf16 %v816_v55, %v815_v54  ;;  %v1939_v41 = vpop.f32.mrb[27].mxu0  ;;  %v1065_v43 = vadd.f32 %v1743_v40, %v1064_v39  ;;  %v2060_v55 = vld [vmem:[%s2566_s1 + $0x78] sm:$0xff]   ;;  %v1772_v39 = vld [vmem:[%s2567_s2 + $0xb] ss:$0 sm:$0xff] }
 0x60e   : > { %1913 = vmatmul.mubr.msk.bf16.vlgmr.msra.gmra.mrb[16].mxu1 %vm477_vm3, %v817_v57  ;;  %v1140_v44 = vpack.c.bf16 %v1065_v43, %v1062_v42 }
 0x60f   : > { %1925 = vmatpush3.bf16.msra.mxu1 %v2053_v56  ;;  %1928 = vmatprep.mubr.msk.bf16.mxu1 %vm2164_vm0, %v2163_v1  ;;  %v1754_v56 = vld [vmem:[%s2567_s2 + $0x3] ss:$0 sm:$0xff] }
 0x610   : > { %1926 = vmatprep.subr.bf16.mxu1 %v2163_v1  ;;  %1947 = vmatpush3.bf16.msra.mxu0 %v1140_v44 }
 0x611   : > { %1960 = vmatprep.subr.bf16.mxu0 %v2163_v1 }
 0x613   : > { %1927 = vmatpush3.bf16.msra.mxu1 %v2054_v58 }
 0x614   : > { %1940 = vmatprep.subr.bf16.mxu1 %v2163_v1 }
 0x616   : > { %1929 = vmatmul.mubr.msk.bf16.vlgmr.msra.gmra.mrb[20].mxu1 %vm250_vm1, %v2274_v7 }
 0x617   : > { %1942 = vmatprep.mubr.msk.bf16.mxu1 %vm2164_vm0, %v2163_v1 }
 0x6e1   : > { %v2405_v4 = vpop.f32.mrb[16].mxu1 }
 0x6e2   : > { %v1914_v5 = vpop.f32.mrb[17].mxu1 }
 0x6e3   : > { %v2407_v6 = vpop.f32.mrb[18].mxu1 }
 0x6e4   : > { %v863_v8 = vpack.c.bf16 %v2407_v6, %v2405_v4  ;;  %v1915_v9 = vpop.f32.mrb[19].mxu1  ;;  %v2065_v6 = vld [vmem:[%s2568_s3] sm:$0xff]  }
 0x6e9   : > { %v995_v11 = vpop.f32.mrb[20].mxu1 }
 0x6ea   : > { %v1930_v12 = vpop.f32.mrb[21].mxu1  ;;  %v996_v14 = vadd.f32 %v1734_v10, %v995_v11 }
 0x6eb   : > { %v998_v13 = vpop.f32.mrb[22].mxu1 }
 0x6ec   : > { %v999_v15 = vadd.f32 %v1734_v10, %v998_v13  ;;  %v1931_v16 = vpop.f32.mrb[23].mxu1  ;;  %v1763_v10 = vld [vmem:[%s2567_s2 + $0x7] ss:$0 sm:$0xff] }
 0x6ee   : > { %v1069_v17 = vpack.c.bf16 %v999_v15, %v996_v14 }
 0x6f0   : > { %v1074_v18 = vsel %vm429_vm2, %v1069_v17, 0 }
 0x6f1   : > { %1941 = vmatpush3.bf16.xpose.msra.mxu1 %v1074_v18 }
 0x6f2   : > { %1952 = vmatprep.subr.bf16.mxu1 %v2163_v1 }
 0x6f8   : > { %1943 = vmatmul.mubr.msk.bf16.vlgmr.msra.gmra.mrb[24].mxu1 %vm429_vm2, %v1068_v3 }
 0x6f9   : > { %1956 = vmatprep.mubr.msk.bf16.mxu1 %vm2164_vm0, %v2163_v1  ;;  %1953 = vmatpush3.bf16.msra.mxu1 %v2061_v45 }
 0x6fa   : > { %1954 = vmatprep.subr.bf16.mxu1 %v2163_v1 }
 0x6fd   : > { %1955 = vmatpush3.bf16.msra.mxu1 %v2062_v46 }
 0x6fe   : > { %1968 = vmatprep.subr.bf16.mxu1 %v2163_v1 }
 0x700   : > { %1957 = vmatmul.mubr.msk.bf16.vlgmr.msra.gmra.mrb[28].mxu1 %vm250_vm1, %v2274_v7 }
 0x701   : > { %1972 = vmatprep.mubr.msk.bf16.mxu1 %vm2164_vm0, %v2163_v1  ;;  %1969 = vmatpush3.bf16.msra.mxu1 %v2063_v19 }
 0x702   : > { %1970 = vmatprep.subr.bf16.mxu1 %v2163_v1 }
 0x705   : > { %1971 = vmatpush3.bf16.msra.mxu1 %v2064_v20 }
 0x706   : > { %1982 = vmatprep.subr.bf16.mxu1 %v2163_v1 }
 0x708   : > { %1973 = vmatmul.mubr.msk.bf16.vlgmr.msra.gmra.mrb[32].mxu1 %vm250_vm1, %v2274_v7 }
 0x709   : > { %1984 = vmatprep.mubr.msk.bf16.mxu1 %vm2164_vm0, %v2163_v1 }
 0x7cb   : > { %v1110_v21 = vpop.f32.mrb[24].mxu1 }
 0x7cc   : > { %v1944_v22 = vpop.f32.mrb[25].mxu1  ;;  %v1117_v23 = vsel %vm477_vm3, %v1110_v21, -inf }
 0x7cd   : > { %1118 = vmax.xlane.f32.xlu0 %v1117_v23  ;;  %v1113_v24 = vpop.f32.mrb[26].mxu1 }
 0x7ce   : > { %v1945_v25 = vpop.f32.mrb[27].mxu1  ;;  %v1120_v26 = vsel %vm477_vm3, %v1113_v24, -inf }
 0x7cf   : > { %1121 = vmax.xlane.f32.xlu1 %v1120_v26 }
 0x7d3   : > { %v1251_v57 = vpop.f32.mrb[28].mxu1 }
 0x7d4   : > { %v1252_v58 = vadd.f32 %v1754_v56, %v1251_v57  ;;  %v1958_v59 = vpop.f32.mrb[29].mxu1 }
 0x7d5   : > { %v1254_v60 = vpop.f32.mrb[30].mxu1 }
 0x7d6   : > { %v1255_v61 = vadd.f32 %v1754_v56, %v1254_v60  ;;  %v1959_v62 = vpop.f32.mrb[31].mxu1 }
 0x7d8   : > { %v1390_v63 = vpack.c.bf16 %v1255_v61, %v1252_v58 }
 0x85a   : > { %v1119_v27 = vpop.xlane.xlu0 %1118 }
 0x85b   : > { %v1123_v28 = vsub.f32 %v1110_v21, %v1119_v27 }
 0x85c   : > { %v1122_v29 = vpop.xlane.xlu1 %1121 }
 0x85d   : > { %v1125_v30 = vmul.f32 1.442695, %v1123_v28  ;;  %v1124_v31 = vsub.f32 %v1113_v24, %v1122_v29 }
 0x85f   : > { %2083 = vpow2.f32 %v1125_v30  ;;  %v1127_v32 = vmul.f32 1.442695, %v1124_v31 }
 0x861   : > { %2085 = vpow2.f32 %v1127_v32 }
 0x869   : > { %v2084_v33 = vpop.eup %2083 }
 0x86a   : > { %v1129_v34 = vsel %vm477_vm3, %v2084_v33, 0.0 }
 0x86b   : > { %v2086_v35 = vpop.eup %2085  ;;  %1130 = vadd.xlane.f32.xlu0 %v1129_v34 }
 0x86c   : > { %v1132_v36 = vsel %vm477_vm3, %v2086_v35, 0.0 }
 0x86d   : > { %1133 = vadd.xlane.f32.xlu1 %v1132_v36  ;;  %v1383_v36 = vpop.f32.mrb[32].mxu1 }
 0x86e   : > { %v1974_v37 = vpop.f32.mrb[33].mxu1  ;;  %v1384_v41 = vadd.f32 %v1772_v39, %v1383_v36 }
 0x86f   : > { %v1386_v38 = vpop.f32.mrb[34].mxu1 }
 0x870   : > { %v1975_v40 = vpop.f32.mrb[35].mxu1  ;;  %v1387_v42 = vadd.f32 %v1772_v39, %v1386_v38 }
 0x872   : > { %v1462_v43 = vpack.c.bf16 %v1387_v42, %v1384_v41 }
 0x874   : > { %1983 = vmatpush3.bf16.msra.mxu1 %v1462_v43 }
 0x8f8   : > { %v1131_v47 = vpop.xlane.xlu0 %1130 }
 0x8f9   : > { %2087 = vrcp.f32 %v1131_v47 }
 0x8fa   : > { %v1134_v48 = vpop.xlane.xlu1 %1133 }
 0x8fb   : > { %2089 = vrcp.f32 %v1134_v48 }
 0x903   : > { %v2088_v49 = vpop.eup %2087 }
 0x904   : > { %v1137_v51 = vmul.f32 %v2088_v49, %v2084_v33 }
 0x905   : > { %v2090_v50 = vpop.eup %2089 }
 0x906   : > { %v1138_v52 = vmul.f32 %v2090_v50, %v2086_v35 }
 0x908   : > { %v1139_v54 = vpack.c.bf16 %v1138_v52, %v1137_v51 }
 0x90a   : > { %1949 = vmatmul.mubr.msk.bf16.vlgmr.msra.gmra.mrb[28].mxu0 %vm477_vm3, %v1139_v54 }
 0x90b   : > { %1961 = vmatpush3.bf16.msra.mxu0 %v2059_v53  ;;  %1964 = vmatprep.mubr.msk.bf16.mxu0 %vm2164_vm0, %v2163_v1 }
 0x90c   : > { %1962 = vmatprep.subr.bf16.mxu0 %v2163_v1 }
 0x90f   : > { %1963 = vmatpush3.bf16.msra.mxu0 %v2060_v55 }
 0x910   : > { %1976 = vmatprep.subr.bf16.mxu0 %v2163_v1 }
 0x912   : > { %1965 = vmatmul.mubr.msk.bf16.vlgmr.msra.gmra.mrb[32].mxu0 %vm250_vm1, %v2274_v7 }
 0x913   : > { %1978 = vmatprep.mubr.msk.bf16.mxu0 %vm2164_vm0, %v2163_v1 }
 0x9dd   : > { %v1178_v0 = vpop.f32.mrb[28].mxu0 }
 0x9de   : > { %v1950_v2 = vpop.f32.mrb[29].mxu0 }
 0x9df   : > { %v1181_v3 = vpop.f32.mrb[30].mxu0 }
 0x9e0   : > { %v1185_v5 = vpack.c.bf16 %v1181_v3, %v1178_v0  ;;  %v1951_v9 = vpop.f32.mrb[31].mxu0 }
 0x9e5   : > { %v1317_v11 = vpop.f32.mrb[32].mxu0 }
 0x9e6   : > { %v1966_v12 = vpop.f32.mrb[33].mxu0  ;;  %v1318_v14 = vadd.f32 %v1763_v10, %v1317_v11 }
 0x9e7   : > { %v1320_v13 = vpop.f32.mrb[34].mxu0 }
 0x9e8   : > { %v1321_v15 = vadd.f32 %v1763_v10, %v1320_v13  ;;  %v1967_v16 = vpop.f32.mrb[35].mxu0 }
 0x9ea   : > { %v1391_v17 = vpack.c.bf16 %v1321_v15, %v1318_v14 }
 0x9ec   : > { %v1396_v18 = vsel %vm429_vm2, %v1391_v17, 0 }
 0x9ed   : > { %1977 = vmatpush3.bf16.xpose.msra.mxu0 %v1396_v18 }
 0x9ee   : > { %1988 = vmatprep.subr.bf16.mxu0 %v2163_v1 }
 0x9f4   : > { %1979 = vmatmul.mubr.msk.bf16.vlgmr.msra.gmra.mrb[36].mxu0 %vm429_vm2, %v1390_v63 }
 0x9f5   : > { %1992 = vmatprep.mubr.msk.bf16.mxu0 %vm2164_vm0, %v2163_v1  ;;  %1989 = vmatpush3.bf16.msra.mxu0 %v2065_v6 }
 0x9f6   : > { %1990 = vmatprep.subr.bf16.mxu0 %v2163_v1  ;;  %v1778_v1 = vld [vmem:[%s2569_s4] ss:$0 sm:$0xff] }
 0xac7   : > { %v1432_v21 = vpop.f32.mrb[36].mxu0 }
 0xac8   : > { %v1980_v22 = vpop.f32.mrb[37].mxu0  ;;  %v1439_v23 = vsel %vm477_vm3, %v1432_v21, -inf }
 0xac9   : > { %1440 = vmax.xlane.f32.xlu0 %v1439_v23  ;;  %v1435_v24 = vpop.f32.mrb[38].mxu0 }
 0xaca   : > { %v1981_v25 = vpop.f32.mrb[39].mxu0  ;;  %v1442_v26 = vsel %vm477_vm3, %v1435_v24, -inf }
 0xacb   : > { %1443 = vmax.xlane.f32.xlu1 %v1442_v26 }
 0xb56   : > { %v1441_v27 = vpop.xlane.xlu0 %1440 }
 0xb57   : > { %v1445_v28 = vsub.f32 %v1432_v21, %v1441_v27 }
 0xb58   : > { %v1444_v29 = vpop.xlane.xlu1 %1443 }
 0xb59   : > { %v1447_v30 = vmul.f32 1.442695, %v1445_v28  ;;  %v1446_v31 = vsub.f32 %v1435_v24, %v1444_v29 }
 0xb5b   : > { %2091 = vpow2.f32 %v1447_v30  ;;  %v1449_v7 = vmul.f32 1.442695, %v1446_v31 }
 0xb5d   : > { %2093 = vpow2.f32 %v1449_v7 }
 0xb65   : > { %v2092_v32 = vpop.eup %2091 }
 0xb66   : > { %v1451_v33 = vsel %vm477_vm3, %v2092_v32, 0.0 }
 0xb67   : > { %v2094_v34 = vpop.eup %2093  ;;  %1452 = vadd.xlane.f32.xlu0 %v1451_v33 }
 0xb68   : > { %v1454_v35 = vsel %vm477_vm3, %v2094_v34, 0.0 }
 0xb69   : > { %1455 = vadd.xlane.f32.xlu1 %v1454_v35 }
 0xb7a   : > { %1187 = vrot.lane.b32.xlu1 %v1185_v5, %s2165_s16 }
 0xb7d   : > { %865 = vrot.lane.b32.xlu0 %v863_v8, %s2166_s25  ;;  %v2066_v8 = vld [vmem:[%s2568_s3 + $0x8] sm:$0xff]  }
 0xb7e   : > { %1991 = vmatpush3.bf16.msra.mxu0 %v2066_v8 }
 0xbf4   : > { %v1453_v44 = vpop.xlane.xlu0 %1452 }
 0xbf5   : > { %2095 = vrcp.f32 %v1453_v44 }
 0xbf6   : > { %v1456_v45 = vpop.xlane.xlu1 %1455 }
 0xbf7   : > { %2097 = vrcp.f32 %v1456_v45 }
 0xbf8   : > { %v866_v46 = vpop.permute.xlu0 %865 }
 0xbf9   : > { %869 = vst.msk [vmem:[#allocation2] sm:$0xff] %vm868_vm4, %v866_v46 }
 0xbfa   : > { %v1188_v47 = vpop.permute.xlu1 %1187 }
 0xbfb   : > { %1191 = vst.msk [vmem:[#allocation2] sm:$0xff] %vm1190_vm5, %v1188_v47 }
 0xbff   : > { %v2096_v48 = vpop.eup %2095 }
 0xc00   : > { %v1459_v50 = vmul.f32 %v2096_v48, %v2092_v32 }
 0xc01   : > { %v2098_v49 = vpop.eup %2097 }
 0xc02   : > { %v1460_v51 = vmul.f32 %v2098_v49, %v2094_v34 }
 0xc04   : > { %v1461_v4 = vpack.c.bf16 %v1460_v51, %v1459_v50 }
 0xc06   : > { %1985 = vmatmul.mubr.msk.bf16.vlgmr.msra.gmra.mrb[36].mxu1 %vm477_vm3, %v1461_v4 }
 0xcd9   : > { %v1500_v52 = vpop.f32.mrb[36].mxu1 }
 0xcda   : > { %v1986_v53 = vpop.f32.mrb[37].mxu1 }
 0xcdb   : > { %v1503_v54 = vpop.f32.mrb[38].mxu1 }
 0xcdc   : > { %v1507_v55 = vpack.c.bf16 %v1503_v54, %v1500_v52  ;;  %v1987_v56 = vpop.f32.mrb[39].mxu1 }
 0xcde   : > { %1509 = vrot.lane.b32.xlu1 %v1507_v55, %s2167_s8 }
 0xd50   : > { %v1510_v57 = vpop.permute.xlu1 %1509 }
 0xd51   : > { %1513 = vst.msk [vmem:[#allocation2] sm:$0xff] %vm1512_vm6, %v1510_v57 }
 0xd58   : > { %v1514_v58 = vld [vmem:[#allocation2] sm:$0xff] }
 0xd59   : > { %1993 = vmatmul.mubr.msk.bf16.vlgmr.msra.gmra.mrb[40].mxu0 %vm250_vm1, %v1514_v58 }
 0xe2c   : > { %v1575_v59 = vpop.f32.mrb[40].mxu0 }
 0xe2d   : > { %v1576_v60 = vadd.f32 %v1778_v1, %v1575_v59  ;;  %v1994_v61 = vpop.f32.mrb[41].mxu0 }
 0xe2e   : > { %v1578_v62 = vpop.f32.mrb[42].mxu0 }
 0xe2f   : > { %1582 = vst.msk [vmem:[%s217_s13] sm:$0xff] %vm250_vm1, %v1576_v60  ;;  %v1579_v63 = vadd.f32 %v1778_v1, %v1578_v62  ;;  %v1995_v0 = vpop.f32.mrb[43].mxu0 }
 0xe31   : > { %1583 = vst.msk [vmem:[%s217_s13 + $0x8] sm:$0xff] %vm250_vm1, %v1579_v63 }
 0xe32   : > { %2112 = shalt.err (!%p2109_p3)
}
 0xe33   : > { %s2113_s8 = scalar_lea.hbm %s2520_s23, 256  ;;  %s2117_s11 = scalar_lea.hbm %s2570_s5, 512 }
 0xe34   : > { %p2114_p4 = scmp.ne.s32.totalorder %s2520_s23, %s2113_s8  ;;  %p2118_p9 = scmp.lt.u32.totalorder %s2520_s23, %s2570_s5 }
 0xe35   : > { %p2119_p10 = scmp.lt.u32.totalorder %s2117_s11, %s2113_s8  ;;  %p2121_p12 = scmp.lt.u32.totalorder %s2113_s8, %s2520_s23 }
 0xe36   : > { %p2115_p7 = pnand %p2114_p4, %p2238_p5 }
 0xe37   : > { %p2120_p11 = por %p2119_p10, %p2118_p9 }
 0xe38   : > { %p2116_p8 = pneg %p2115_p7 }
 0xe39   : > { %p2122_p13 = por %p2121_p12, %p2120_p11 }
 0xe3b   : > { %p2123_p0 = pnand %p2122_p13, %p2116_p8 }
 0xe3d   : > { %2126 = shalt.err (!%p2123_p0)
}
 0xe3e   : > { %s2169_s15 = smov 128  }
 0xe3f   : > { %1996 = dma.vmem_to_hbm [thread:$0]  (%p2238_p5), %s2514_s14, 256, %s2520_s23, %s2523_s22, %s2169_s15, %s2169_s15, %s2166_s25  }
 0xe40 PF: > { %p2002_p1 = scmp.ge.s32.totalorder %s2161_s21, 2  ;;  %s1613_s16 = sand.u32 1, %s2149_s18  }
 0xe41   : > { %s1614_s17 = scalar_lea.sflag [#allocation4], %s1613_s16 }
 0xe42   : > { %p1999_p2 = pnand %p2002_p1, %p2242_p6 }
 0xe44   : > { %2144 = dma.done.wait (!%p1999_p2), %s1614_s17, 256  }
 0xe45   : > { %2146 = vsyncadd (!%p1999_p2), %s1614_s17, 4294967040  ;;  %p15_p3 = scmp.ge.s32.totalorder %s2225_s24, 4   ;;  %s2573_s18 = smov %s2153_s19 }
 0xe46   : > { %s2574_s19 = smov %s2157_s20  ;;  %s2575_s20 = smov %s2236_s27 }
 0xe47   : > { %s2576_s21 = smov %s2225_s24  ;;  %17 = sbr.rel (!%p15_p3) target bundleno = 3 (0x3), region = 97 }
 0xe4e   :  { %1619 = vsyncpa [#allocation4], 1 }
 0xe4f   :  { %1621 = vsyncpa [#allocation4 + $0x1], 1 }

</bundles_post_ra>
